<compile_context>
chip_gen: v6e
topology: v6e:2x2x1
jax: 0.10.0
libtpu: 0.0.40
codegen_flags: <defaults>
</compile_context>

<pallas_src>
import functools

import jax
import jax.numpy as jnp
from jax.experimental import pallas as pl
from jax.experimental.pallas import tpu as pltpu

IMG = 28
FEAT = IMG * IMG               # 784
HID = 32                       # classifier hidden width
NUM_CLASSES = 4                # sudoku digits 1..4 (4x4 puzzle)
NUM_DIGITS = NUM_CLASSES + 1   # classifier classes 0..4 (0 = blank)
TN_MAX = 2048                  # max rows (cell images) per grid step


def _round_up(x, m):
    return ((x + m - 1) // m) * m


def _pick_tile(n):
    """Row-tile size: big enough to amortize per-step overhead, small enough
    to fit VMEM, and >=2 grid steps for mid/large n (v7x megacore)."""
    if n <= 512:
        # Single block whose first dim equals the full array dim (always a
        # legal block shape, no (8,128) divisibility requirement).
        return n
    # >= 2 steps; multiple of 16 (bf16 sublane packing), capped at TN_MAX.
    return min(TN_MAX, _round_up(pl.cdiv(n, 2), 16))


def _encoder_kernel(x_ref, w1_ref, b1_ref, w2_ref, b2_ref, out_ref, *, renormalize):
    """Fused per-tile classifier: MLP + log_softmax + class-0 drop + negation.

    Classifier columns are pre-permuted in the wrapper so the blank class (0)
    is the LAST logit column; columns 0..NUM_CLASSES-1 are digits 1..NUM_CLASSES.

    x_ref  : (tn, FEAT)        bf16 flattened cell images
    w1_ref : (FEAT, HID)       bf16
    b1_ref : (1, HID)          f32
    w2_ref : (HID, NUM_DIGITS) bf16  (columns permuted: digits first, blank last)
    b2_ref : (1, NUM_DIGITS)   f32
    out_ref: (tn, NUM_CLASSES) f32   -log_prob of digits 1..NUM_CLASSES
    """
    x = x_ref[...]
    h = jnp.dot(x, w1_ref[...], preferred_element_type=jnp.float32)
    h = jnp.maximum(h + b1_ref[...], 0.0)
    logits = jnp.dot(h.astype(jnp.bfloat16), w2_ref[...],
                     preferred_element_type=jnp.float32) + b2_ref[...]

    # Numerically stable log-sum-exp over the digit axis (f32).
    m = jnp.max(logits, axis=-1, keepdims=True)
    lse = m + jnp.log(jnp.sum(jnp.exp(logits - m), axis=-1, keepdims=True))

    # -log_softmax for the digit classes only (first NUM_CLASSES lane columns).
    neg_digit_lp = lse - logits[:, :NUM_CLASSES]

    if renormalize:
        # log p0 lives in the last column (static lane slice).
        lp0 = logits[:, NUM_CLASSES:NUM_DIGITS] - lse
        # log(1 - p0), written exactly as the torch expression.
        log_non_zero = jnp.log1p(-1.0 - jnp.expm1(lp0))
        neg_digit_lp = neg_digit_lp + log_non_zero

    out_ref[...] = neg_digit_lp


def visual_sudoku_logprob_c_encoder(x, w1, b1, w2, b2, renormalize=False):
    """x: (batch, num_cells, 28, 28) float -> (batch, num_cells*NUM_CLASSES) f32."""
    batch, num_cells, hh, ww = x.shape
    assert hh == IMG and ww == IMG
    n = batch * num_cells

    # bf16 image stream: halves the dominant HBM traffic into the kernel.
    x_flat = x.reshape(n, FEAT).astype(jnp.bfloat16)

    # Weights in bf16 for the MXU; biases stay f32 (added post-accumulation).
    w1b = jnp.asarray(w1, jnp.float32).astype(jnp.bfloat16)
    b1f = jnp.asarray(b1, jnp.float32).reshape(1, HID)
    w2f = jnp.asarray(w2, jnp.float32)
    b2f = jnp.asarray(b2, jnp.float32)
    # Permute classifier outputs so class 0 (blank) is last: [1..NUM_CLASSES, 0].
    w2p = jnp.concatenate([w2f[:, 1:], w2f[:, :1]], axis=1).astype(jnp.bfloat16)
    b2p = jnp.concatenate([b2f[1:], b2f[:1]]).reshape(1, NUM_DIGITS)

    tn = _pick_tile(n)
    grid = (pl.cdiv(n, tn),)

    cost = pl.CostEstimate(
        flops=2 * n * (FEAT * HID + HID * NUM_DIGITS),
        transcendentals=n * (NUM_DIGITS + 1 + (2 if renormalize else 0)),
        bytes_accessed=(n * FEAT * 2 + n * NUM_CLASSES * 4
                        + FEAT * HID * 2 + HID * NUM_DIGITS * 2
                        + (HID + NUM_DIGITS) * 4),
    )

    kernel = functools.partial(_encoder_kernel, renormalize=renormalize)

    neg_digit_lp = pl.pallas_call(
        kernel,
        out_shape=jax.ShapeDtypeStruct((n, NUM_CLASSES), jnp.float32),
        grid=grid,
        in_specs=[
            pl.BlockSpec((tn, FEAT), lambda i: (i, 0)),
            pl.BlockSpec((FEAT, HID), lambda i: (0, 0)),
            pl.BlockSpec((1, HID), lambda i: (0, 0)),
            pl.BlockSpec((HID, NUM_DIGITS), lambda i: (0, 0)),
            pl.BlockSpec((1, NUM_DIGITS), lambda i: (0, 0)),
        ],
        out_specs=pl.BlockSpec((tn, NUM_CLASSES), lambda i: (i, 0)),
        compiler_params=pltpu.CompilerParams(
            dimension_semantics=("parallel",),
            # ~15 MiB needed at tn=2048 bf16 (2x double-buffered 896-lane x
            # tiles + 2x lane-padded (tn,128) out tiles + weights); 32 MiB cap
            # is comfortable on every chip incl. v5e's 16 MiB default.
            vmem_limit_bytes=32 * 1024 * 1024,
        ),
        cost_estimate=cost,
    )(x_flat, w1b, b1f, w2p, b2p)

    # TODO(synk): log_predictions() only fills a logging scratch dict (argmax /
    # rounded probs) and has no effect on the forward output; skipped.

    return neg_digit_lp.reshape(batch, num_cells * NUM_CLASSES)


def _reference(x, w1, b1, w2, b2, renormalize=False):
    """Pure-JAX f32 reference mirroring the PyTorch forward."""
    batch, num_cells = x.shape[0], x.shape[1]
    x_flat = x.reshape(-1, FEAT).astype(jnp.float32)
    h = jnp.maximum(x_flat @ w1 + b1, 0.0)
    logits = h @ w2 + b2
    log_prob = jax.nn.log_softmax(logits, axis=-1)
    log_prob = log_prob.reshape(batch, num_cells, NUM_DIGITS)
    if renormalize:
        lpn0 = jnp.log1p(-1.0 - jnp.expm1(log_prob[:, :, 0:1]))
        digit_lp = log_prob[:, :, 1:] - lpn0
    else:
        digit_lp = log_prob[:, :, 1:]
    return (-1.0 * digit_lp).reshape(batch, -1)


if __name__ == "__main__":
    key = jax.random.PRNGKey(0)
    k_x, k_w1, k_b1, k_w2, k_b2 = jax.random.split(key, 5)

    # deterministic synthetic classifier parameters
    w1 = jax.random.normal(k_w1, (FEAT, HID), jnp.float32) * 0.05
    b1 = jax.random.normal(k_b1, (HID,), jnp.float32) * 0.01
    w2 = jax.random.normal(k_w2, (HID, NUM_DIGITS), jnp.float32) * 0.1
    b2 = jax.random.normal(k_b2, (NUM_DIGITS,), jnp.float32) * 0.01

    ok = True
    # (batch=2: the basic single-block path; batch=37: >512 rows, two grid
    # steps with a masked partial last block.)
    for batch in (2, 37):
        num_cells = 16                                  # 4x4 sudoku -> 16 cells
        x = jax.random.uniform(k_x, (batch, num_cells, IMG, IMG), jnp.float32)
        for renorm in (False, True):
            out = visual_sudoku_logprob_c_encoder(x, w1, b1, w2, b2,
                                                  renormalize=renorm)
            out = jax.block_until_ready(out)
            ref = _reference(x, w1, b1, w2, b2, renormalize=renorm)
            assert out.shape == (batch, num_cells * NUM_CLASSES), out.shape
            # bf16 image/weight streaming => relaxed tolerance vs f32 reference.
            ok &= bool(jnp.allclose(out, ref, atol=2.5e-2, rtol=2.5e-2))

    assert ok, "mismatch vs reference"
    print("KERNEL_OK")
</pallas_src>

<mosaic_0001>
module attributes {stable_mosaic.version = 11 : i64} {
  func.func @_encoder_kernel(%arg0: i32, %arg1: memref<32x784xbf16, #tpu.memory_space<vmem>>, %arg2: memref<784x32xbf16, #tpu.memory_space<vmem>>, %arg3: memref<1x32xf32, #tpu.memory_space<vmem>>, %arg4: memref<32x5xbf16, #tpu.memory_space<vmem>>, %arg5: memref<1x5xf32, #tpu.memory_space<vmem>>, %arg6: memref<32x4xf32, #tpu.memory_space<vmem>>) attributes {dimension_semantics = [#tpu.dimension_semantics<parallel>], iteration_bounds = array<i64: 1>, scalar_prefetch = 0 : i64, scratch_operands = 0 : i64, tpu.core_type = #tpu.core_type<tc>, window_params = [{transform_indices = @transform_0, window_bounds = array<i64: 32, 784>}, {pipeline_mode = #tpu.pipeline_mode<synchronous>, transform_indices = @transform_1, window_bounds = array<i64: 784, 32>}, {pipeline_mode = #tpu.pipeline_mode<synchronous>, transform_indices = @transform_2, window_bounds = array<i64: 1, 32>}, {pipeline_mode = #tpu.pipeline_mode<synchronous>, transform_indices = @transform_3, window_bounds = array<i64: 32, 5>}, {pipeline_mode = #tpu.pipeline_mode<synchronous>, transform_indices = @transform_4, window_bounds = array<i64: 1, 5>}, {transform_indices = @transform_5, window_bounds = array<i64: 32, 4>}]} {
    %c0 = arith.constant 0 : index
    %c0_0 = arith.constant 0 : index
    %0 = vector.load %arg1[%c0, %c0_0] : memref<32x784xbf16, #tpu.memory_space<vmem>>, vector<32x784xbf16>
    %c0_1 = arith.constant 0 : index
    %c0_2 = arith.constant 0 : index
    %1 = vector.load %arg2[%c0_1, %c0_2] : memref<784x32xbf16, #tpu.memory_space<vmem>>, vector<784x32xbf16>
    %cst = arith.constant dense<0.000000e+00> : vector<32x32xf32>
    %2 = tpu.matmul %0, %1, %cst {dimension_numbers = #tpu.dot_dimension_numbers<[1], [0], [0], [1], [0, 0, 1, 1], [], []>} : vector<32x784xbf16>, vector<784x32xbf16>, vector<32x32xf32> -> vector<32x32xf32>
    %c0_3 = arith.constant 0 : index
    %c0_4 = arith.constant 0 : index
    %3 = vector.load %arg3[%c0_3, %c0_4] : memref<1x32xf32, #tpu.memory_space<vmem>>, vector<1x32xf32>
    %4 = vector.broadcast %3 : vector<1x32xf32> to vector<32x32xf32>
    %5 = arith.addf %2, %4 : vector<32x32xf32>
    %cst_5 = arith.constant 0.000000e+00 : f32
    %6 = vector.broadcast %cst_5 : f32 to vector<32x32xf32>
    %7 = arith.maximumf %5, %6 : vector<32x32xf32>
    %8 = arith.truncf %7 : vector<32x32xf32> to vector<32x32xbf16>
    %c0_6 = arith.constant 0 : index
    %c0_7 = arith.constant 0 : index
    %9 = vector.load %arg4[%c0_6, %c0_7] : memref<32x5xbf16, #tpu.memory_space<vmem>>, vector<32x5xbf16>
    %cst_8 = arith.constant dense<0.000000e+00> : vector<32x5xf32>
    %10 = tpu.matmul %8, %9, %cst_8 {dimension_numbers = #tpu.dot_dimension_numbers<[1], [0], [0], [1], [0, 0, 1, 1], [], []>} : vector<32x32xbf16>, vector<32x5xbf16>, vector<32x5xf32> -> vector<32x5xf32>
    %c0_9 = arith.constant 0 : index
    %c0_10 = arith.constant 0 : index
    %11 = vector.load %arg5[%c0_9, %c0_10] : memref<1x5xf32, #tpu.memory_space<vmem>>, vector<1x5xf32>
    %12 = vector.broadcast %11 : vector<1x5xf32> to vector<32x5xf32>
    %13 = arith.addf %10, %12 : vector<32x5xf32>
    %cst_11 = arith.constant dense<0xFF800000> : vector<32xf32>
    %14 = vector.multi_reduction <maximumf>, %13, %cst_11 [1] : vector<32x5xf32> to vector<32xf32>
    %15 = vector.shape_cast %14 : vector<32xf32> to vector<32x1xf32>
    %16 = vector.broadcast %15 : vector<32x1xf32> to vector<32x5xf32>
    %17 = arith.subf %13, %16 : vector<32x5xf32>
    %18 = math.exp %17 : vector<32x5xf32>
    %cst_12 = arith.constant dense<0.000000e+00> : vector<32xf32>
    %19 = vector.multi_reduction <add>, %18, %cst_12 [1] : vector<32x5xf32> to vector<32xf32>
    %20 = vector.shape_cast %19 : vector<32xf32> to vector<32x1xf32>
    %21 = math.log %20 : vector<32x1xf32>
    %22 = arith.addf %15, %21 : vector<32x1xf32>
    %23 = vector.extract_strided_slice %13 {offsets = [0, 0], sizes = [32, 4], strides = [1, 1]} : vector<32x5xf32> to vector<32x4xf32>
    %24 = vector.broadcast %22 : vector<32x1xf32> to vector<32x4xf32>
    %25 = arith.subf %24, %23 : vector<32x4xf32>
    %c0_13 = arith.constant 0 : index
    %c0_14 = arith.constant 0 : index
    %26 = vector.load %arg6[%c0_13, %c0_14] : memref<32x4xf32, #tpu.memory_space<vmem>>, vector<32x4xf32>
    tpu.vector_store %arg6[%c0_13, %c0_14], %25 {strides = array<i32>} : memref<32x4xf32, #tpu.memory_space<vmem>>, vector<32x4xf32>,
    return
  }
  func.func @transform_0(%arg0: i32) -> (i32, i32) {
    %c0_i32 = arith.constant 0 : i32
    %c0_i32_0 = arith.constant 0 : i32
    return %arg0, %c0_i32 : i32, i32
  }
  func.func @transform_1(%arg0: i32) -> (i32, i32) {
    %c0_i32 = arith.constant 0 : i32
    %c0_i32_0 = arith.constant 0 : i32
    %c0_i32_1 = arith.constant 0 : i32
    return %c0_i32, %c0_i32_0 : i32, i32
  }
  func.func @transform_2(%arg0: i32) -> (i32, i32) {
    %c0_i32 = arith.constant 0 : i32
    %c0_i32_0 = arith.constant 0 : i32
    %c0_i32_1 = arith.constant 0 : i32
    return %c0_i32, %c0_i32_0 : i32, i32
  }
  func.func @transform_3(%arg0: i32) -> (i32, i32) {
    %c0_i32 = arith.constant 0 : i32
    %c0_i32_0 = arith.constant 0 : i32
    %c0_i32_1 = arith.constant 0 : i32
    return %c0_i32, %c0_i32_0 : i32, i32
  }
  func.func @transform_4(%arg0: i32) -> (i32, i32) {
    %c0_i32 = arith.constant 0 : i32
    %c0_i32_0 = arith.constant 0 : i32
    %c0_i32_1 = arith.constant 0 : i32
    return %c0_i32, %c0_i32_0 : i32, i32
  }
  func.func @transform_5(%arg0: i32) -> (i32, i32) {
    %c0_i32 = arith.constant 0 : i32
    %c0_i32_0 = arith.constant 0 : i32
    return %arg0, %c0_i32 : i32, i32
  }
}

</mosaic_0001>

<bundles_post_ra>
// kernel: tpu_custom_call.1
= control target key start
LH: loop header
LB: loop body
LE: loop exit
PB: predicated region body
PF: predicated region fallthrough
CT: control target
= control target key end

     0   :  { %vm506_vm0 = vcmask 130048   ;;  %vm738_vm1 = vcmask 261120   ;;  %vm794_vm2 = vcmask 39936   ;;  %vm847_vm3 = vcmask 31744   ;;  %s1384_s1 = inlined_call_operand.vmem [shape: bf16[784,32], index: 1, kind: input, shape index: {}]   ;;  %s1385_s0 = inlined_call_operand.vmem [shape: bf16[32,784], index: 0, kind: input, shape index: {}]   ;;  %s1386_s3 = inlined_call_operand.vmem [shape: bf16[32,5], index: 3, kind: input, shape index: {}]   ;;  %s1387_s2 = inlined_call_operand.vmem [shape: f32[1,32], index: 2, kind: input, shape index: {}]   ;;  %s1388_s4 = inlined_call_operand.vmem [shape: f32[1,5], index: 4, kind: input, shape index: {}]   ;;  %s1389_s5 = inlined_call_operand.vmem [shape: f32[32,4], index: 5, kind: output, shape index: {}]  }
   0x1   :  { %v1032_v0 = vld [vmem:[%s1384_s1 + $0x78] sm:$0xff]   ;;  %v1036_v4 = vld [vmem:[%s1384_s1 + $0x70] sm:$0xff]   ;;  %v1040_v8 = vld [vmem:[%s1384_s1 + $0x68] sm:$0xff]  }
   0x2   :  { %v1033_v1 = vld [vmem:[%s1384_s1 + $0x38] sm:$0xff]   ;;  %927 = vmatprep.subr.bf16.mxu0 %v1032_v0  ;;  %v1037_v5 = vld [vmem:[%s1384_s1 + $0x30] sm:$0xff]   ;;  %v1041_v9 = vld [vmem:[%s1384_s1 + $0x28] sm:$0xff]  }
   0x3   :  { %v1034_v2 = vld [vmem:[%s1384_s1 + $0xf8] sm:$0xff]   ;;  %928 = vmatpush3.bf16.msra.mxu0 %v1033_v1  ;;  %v1038_v6 = vld [vmem:[%s1384_s1 + $0xf0] sm:$0xff]   ;;  %v1042_v10 = vld [vmem:[%s1384_s1 + $0xe8] sm:$0xff]  }
   0x4   :  { %v1035_v3 = vld [vmem:[%s1384_s1 + $0xb8] sm:$0xff]   ;;  %955 = vmatprep.subr.bf16.mxu1 %v1034_v2  ;;  %929 = vmatprep.subr.bf16.mxu0 %v1036_v4  ;;  %v1039_v7 = vld [vmem:[%s1384_s1 + $0xb0] sm:$0xff]   ;;  %v1043_v11 = vld [vmem:[%s1384_s1 + $0xa8] sm:$0xff]  }
   0x5   :  { %956 = vmatpush3.bf16.msra.mxu1 %v1035_v3  ;;  %v1044_v12 = vld [vmem:[%s1384_s1 + $0x60] sm:$0xff]   ;;  %v1048_v16 = vld [vmem:[%s1384_s1 + $0x58] sm:$0xff]   ;;  %v1052_v20 = vld [vmem:[%s1384_s1 + $0x50] sm:$0xff]  }
   0x6   :  { %957 = vmatprep.subr.bf16.mxu1 %v1038_v6  ;;  %v1045_v13 = vld [vmem:[%s1384_s1 + $0x20] sm:$0xff]   ;;  %v1049_v17 = vld [vmem:[%s1384_s1 + $0x18] sm:$0xff]   ;;  %v1053_v21 = vld [vmem:[%s1384_s1 + $0x10] sm:$0xff]  }
   0x7   :  { %930 = vmatpush3.bf16.msra.mxu0 %v1037_v5  ;;  %v1046_v14 = vld [vmem:[%s1384_s1 + $0xe0] sm:$0xff]   ;;  %v1050_v18 = vld [vmem:[%s1384_s1 + $0xd8] sm:$0xff]   ;;  %v1054_v22 = vld [vmem:[%s1384_s1 + $0xd0] sm:$0xff]  }
   0x8   :  { %931 = vmatprep.subr.bf16.mxu0 %v1040_v8  ;;  %v1047_v15 = vld [vmem:[%s1384_s1 + $0xa0] sm:$0xff]   ;;  %v1051_v19 = vld [vmem:[%s1384_s1 + $0x98] sm:$0xff]   ;;  %v1055_v23 = vld [vmem:[%s1384_s1 + $0x90] sm:$0xff]  }
   0x9   :  { %958 = vmatpush3.bf16.msra.mxu1 %v1039_v7  ;;  %v1056_v24 = vld [vmem:[%s1384_s1 + $0x48] sm:$0xff]   ;;  %v1060_v28 = vld [vmem:[%s1384_s1 + $0x40] sm:$0xff]   ;;  %v1067_v34 = vld [vmem:[%s1384_s1 + $0x178] sm:$0xff]  }
   0xa   :  { %959 = vmatprep.subr.bf16.mxu1 %v1042_v10  ;;  %v1057_v25 = vld [vmem:[%s1384_s1 + $0x8] sm:$0xff]   ;;  %v1061_v29 = vld [vmem:[%s1384_s1] sm:$0xff]   ;;  %v1071_v37 = vld [vmem:[%s1384_s1 + $0x138] sm:$0xff]  }
   0xb   :  { %932 = vmatpush3.bf16.msra.mxu0 %v1041_v9  ;;  %v1058_v26 = vld [vmem:[%s1384_s1 + $0xc8] sm:$0xff]   ;;  %v1062_v30 = vld [vmem:[%s1384_s1 + $0xc0] sm:$0xff]   ;;  %v1072_v38 = vld [vmem:[%s1384_s1 + $0x170] sm:$0xff]  }
   0xc   :  { %933 = vmatprep.subr.bf16.mxu0 %v1044_v12  ;;  %v1059_v27 = vld [vmem:[%s1384_s1 + $0x88] sm:$0xff]   ;;  %v1063_v31 = vld [vmem:[%s1385_s0] ss:$28 sps:$4 sm:$0xff]   ;;  %v1073_v39 = vld [vmem:[%s1384_s1 + $0x130] sm:$0xff]  }
   0xd   :  { %960 = vmatpush3.bf16.msra.mxu1 %v1043_v11  ;;  %v1065_v32 = vld [vmem:[%s1385_s0 + $0x4] ss:$28 sps:$4 sm:$0xff]   ;;  %v1070_v36 = vld [vmem:[%s1385_s0 + $0xc] ss:$28 sps:$4 sm:$0xff]   ;;  %v1079_v44 = vld [vmem:[%s1385_s0 + $0x3c] ss:$28 sps:$4 sm:$0xff]  }
   0xe   :  { %961 = vmatprep.subr.bf16.mxu1 %v1046_v14  ;;  %v1066_v33 = vld [vmem:[%s1384_s1 + $0x80] sm:$0xff]   ;;  %545 = vmatprep.mubr.bf16.mxu0 %v1065_v32  ;;  %v1074_v40 = vld [vmem:[%s1384_s1 + $0x168] sm:$0xff]   ;;  %v1078_v45 = vld [vmem:[%s1384_s1 + $0x158] sm:$0xff]  }
   0xf   :  { %934 = vmatpush3.bf16.msra.mxu0 %v1045_v13  ;;  %v1068_v35 = vld [vmem:[%s1385_s0 + $0x8] ss:$28 sps:$4 sm:$0xff]   ;;  %594 = vmatprep.mubr.bf16.mxu1 %v1070_v36  ;;  %v1082_v46 = vld [vmem:[%s1385_s0 + $0x38] ss:$28 sps:$4 sm:$0xff]   ;;  %v1085_v48 = vld [vmem:[%s1385_s0 + $0x40] ss:$28 sps:$4 sm:$0xff]  }
  0x10   :  { %935 = vmatprep.subr.bf16.mxu0 %v1048_v16  ;;  %v1075_v41 = vld [vmem:[%s1384_s1 + $0x128] sm:$0xff]   ;;  %v1076_v42 = vld [vmem:[%s1384_s1 + $0x160] sm:$0xff]   ;;  %v1081_v49 = vld [vmem:[%s1384_s1 + $0x118] sm:$0xff]  }
  0x11   :  { %962 = vmatpush3.bf16.msra.mxu1 %v1047_v15  ;;  %v1077_v43 = vld [vmem:[%s1384_s1 + $0x120] sm:$0xff]   ;;  %v1086_v50 = vld [vmem:[%s1384_s1 + $0x150] sm:$0xff]   ;;  %v1088_v53 = vld [vmem:[%s1384_s1 + $0x148] sm:$0xff]  }
  0x12   :  { %963 = vmatprep.subr.bf16.mxu1 %v1050_v18  ;;  %v1083_v47 = vld [vmem:[%s1385_s0 + $0x44] ss:$28 sps:$4 sm:$0xff]   ;;  %v1087_v52 = vld [vmem:[%s1384_s1 + $0x110] sm:$0xff]   ;;  %v1089_v57 = vld [vmem:[%s1384_s1 + $0x108] sm:$0xff]  }
  0x13   :  { %936 = vmatpush3.bf16.msra.mxu0 %v1049_v17  ;;  %v1090_v51 = vld [vmem:[%s1384_s1 + $0x180] sm:$0xff]   ;;  %v1095_v54 = vld [vmem:[%s1385_s0 + $0x14] ss:$28 sps:$4 sm:$0xff]   ;;  %v1098_v61 = vld [vmem:[%s1385_s0 + $0x4c] ss:$28 sps:$4 sm:$0xff]  }
  0x14   :  { %937 = vmatprep.subr.bf16.mxu0 %v1052_v20  ;;  %v1096_v55 = vld [vmem:[%s1385_s0 + $0x18] ss:$28 sps:$4 sm:$0xff]   ;;  %v1097_v56 = vld [vmem:[%s1385_s0 + $0x50] ss:$28 sps:$4 sm:$0xff]   ;;  %v1091_v58 = vld [vmem:[%s1384_s1 + $0x140] sm:$0xff]  }
  0x15   :  { %964 = vmatpush3.bf16.msra.mxu1 %v1051_v19  ;;  %v1092_v59 = vld [vmem:[%s1384_s1 + $0x100] sm:$0xff]   ;;  %v1093_v60 = vld [vmem:[%s1385_s0 + $0x10] ss:$28 sps:$4 sm:$0xff]  }
  0x16   :  { %965 = vmatprep.subr.bf16.mxu1 %v1054_v22  ;;  %v1100_v62 = vld [vmem:[%s1385_s0 + $0x48] ss:$28 sps:$4 sm:$0xff]   ;;  %v856_v17 = vld [vmem:[%s1387_s2] ss:$0 sm:$0xff] }
  0x17   :  { %938 = vmatpush3.bf16.msra.mxu0 %v1053_v21  ;;  %v1101_v63 = vld [vmem:[%s1386_s3 + $0x8] sm:$0xff]   ;;  %v1102_v0 = vld [vmem:[%s1386_s3] sm:$0xff]  }
  0x18   :  { %939 = vmatprep.subr.bf16.mxu0 %v1056_v24 }
  0x19   :  { %966 = vmatpush3.bf16.msra.mxu1 %v1055_v23 }
  0x1a   :  { %967 = vmatprep.subr.bf16.mxu1 %v1058_v26 }
  0x1b   :  { %940 = vmatpush3.bf16.msra.mxu0 %v1057_v25 }
  0x1c   :  { %941 = vmatprep.subr.bf16.mxu0 %v1060_v28 }
  0x1d   :  { %968 = vmatpush3.bf16.msra.mxu1 %v1059_v27 }
  0x1e   :  { %969 = vmatprep.subr.bf16.mxu1 %v1062_v30 }
  0x1f   :  { %942 = vmatpush3.bf16.msra.mxu0 %v1061_v29 }
  0x20   :  { %983 = vmatprep.subr.bf16.mxu0 %v1067_v34 }
  0x21   :  { %970 = vmatpush3.bf16.msra.mxu1 %v1066_v33 }
  0x22   :  { %546 = vmatmul.mubr.bf16.vlgmr.msra.gmra.mxu0 %v1063_v31  ;;  %1018 = vmatprep.subr.bf16.mxu1 %v1090_v51 }
  0x23   :  { %984 = vmatpush3.bf16.msra.mxu0 %v1071_v37  ;;  %553 = vmatprep.mubr.bf16.mxu0 %v1079_v44 }
  0x24   :  { %595 = vmatmul.mubr.bf16.vlgmr.msra.gmra.mxu1 %v1068_v35  ;;  %985 = vmatprep.subr.bf16.mxu0 %v1072_v38 }
  0x25   :  { %602 = vmatprep.mubr.bf16.mxu1 %v1083_v47  ;;  %1019 = vmatpush3.bf16.msra.mxu1 %v1090_v51 }
  0x26   :  { %1024 = vmatprep.subr.bf16.mxu1 %v1101_v63 }
  0x27   :  { %986 = vmatpush3.bf16.msra.mxu0 %v1073_v39 }
  0x28   :  { %987 = vmatprep.subr.bf16.mxu0 %v1074_v40 }
  0x2a   :  { %554 = vmatmul.mubr.bf16.gmra.mxu0 %v1082_v46 }
  0x2b   :  { %988 = vmatpush3.bf16.msra.mxu0 %v1075_v41  ;;  %643 = vmatprep.mubr.bf16.mxu0 %v1095_v54 }
  0x2c   :  { %989 = vmatprep.subr.bf16.mxu0 %v1076_v42  ;;  %603 = vmatmul.mubr.bf16.gmra.mxu1 %v1085_v48 }
  0x2d   :  { %1020 = vmatprep.mubr.msk.bf16.mxu1 %vm506_vm0, %v1096_v55 }
  0x2f   :  { %990 = vmatpush3.bf16.msra.mxu0 %v1077_v43 }
  0x30   :  { %991 = vmatprep.subr.bf16.mxu0 %v1078_v45 }
  0x33   :  { %992 = vmatpush3.bf16.msra.mxu0 %v1081_v49 }
  0x34   :  { %993 = vmatprep.subr.bf16.mxu0 %v1086_v50  ;;  %1021 = vmatmul.mubr.msk.bf16.vlgmr.msra.gmra.mxu1 %vm506_vm0, %v1097_v56 }
  0x35   :  { %1025 = vmatpush3.bf16.msra.mxu1 %v1101_v63 }
  0x36   :  { %1026 = vmatprep.subr.bf16.mxu1 %v1102_v0 }
  0x37   :  { %994 = vmatpush3.bf16.msra.mxu0 %v1087_v52 }
  0x38   :  { %995 = vmatprep.subr.bf16.mxu0 %v1088_v53 }
  0x39   :  { %1027 = vmatpush3.bf16.msra.mxu1 %v1102_v0  ;;  %v922_v0 = vld [vmem:[%s1388_s4] ss:$0 sm:$0xff] }
  0x3b   :  { %996 = vmatpush3.bf16.msra.mxu0 %v1089_v57 }
  0x3c   :  { %997 = vmatprep.subr.bf16.mxu0 %v1091_v58 }
  0x3f   :  { %998 = vmatpush3.bf16.msra.mxu0 %v1092_v59 }
  0x42   :  { %644 = vmatmul.mubr.bf16.vlgmr.msra.gmra.mxu0 %v1093_v60 }
  0x43   :  { %651 = vmatprep.mubr.bf16.mxu0 %v1098_v61 }
  0x4a   :  { %652 = vmatmul.mubr.bf16.gmra.mxu0 %v1100_v62 }
  0xe2   :  { %v943_v2 = vpop.f32.mrf.mxu0 }
  0xe4   :  { %v971_v1 = vpop.f32.mrf.mxu1  ;;  %v944_v4 = vpop.f32.mrf.mxu0 }
  0xe5   :  { %v945_v16 = vadd.f32 %v944_v4, %v943_v2 }
  0xe6   :  { %v972_v3 = vpop.f32.mrf.mxu1  ;;  %v946_v6 = vpop.f32.mrf.mxu0 }
  0xe7   :  { %v548_v20 = vadd.f32 %v945_v16, %v856_v17  ;;  %v973_v21 = vadd.f32 %v972_v3, %v971_v1 }
  0xe8   :  { %v974_v5 = vpop.f32.mrf.mxu1  ;;  %v947_v9 = vpop.f32.mrf.mxu0 }
  0xe9   :  { %v948_v22 = vadd.f32 %v947_v9, %v946_v6  ;;  %v597_v27 = vadd.f32 %v973_v21, %v548_v20 }
  0xea   :  { %v975_v7 = vpop.f32.mrf.mxu1  ;;  %v949_v10 = vpop.f32.mrf.mxu0 }
  0xeb   :  { %v551_v28 = vadd.f32 %v948_v22, %v856_v17  ;;  %v976_v29 = vadd.f32 %v975_v7, %v974_v5 }
  0xec   :  { %v977_v8 = vpop.f32.mrf.mxu1  ;;  %v950_v12 = vpop.f32.mrf.mxu0 }
  0xed   :  { %v951_v25 = vadd.f32 %v950_v12, %v949_v10  ;;  %v600_v37 = vadd.f32 %v976_v29, %v551_v28 }
  0xee   :  { %v978_v11 = vpop.f32.mrf.mxu1  ;;  %v952_v14 = vpop.f32.mrf.mxu0 }
  0xef   :  { %v556_v34 = vadd.f32 %v951_v25, %v856_v17  ;;  %v979_v35 = vadd.f32 %v978_v11, %v977_v8 }
  0xf0   :  { %v980_v13 = vpop.f32.mrf.mxu1  ;;  %v953_v19 = vpop.f32.mrf.mxu0 }
  0xf1   :  { %v954_v38 = vadd.f32 %v953_v19, %v952_v14  ;;  %v605_v44 = vadd.f32 %v979_v35, %v556_v34 }
  0xf2   :  { %v981_v15 = vpop.f32.mrf.mxu1 }
  0xf3   :  { %v559_v46 = vadd.f32 %v954_v38, %v856_v17  ;;  %v982_v47 = vadd.f32 %v981_v15, %v980_v13 }
  0xf4   :  { %v1022_v18 = vpop.f32.mrf.mxu1 }
  0xf5   :  { %v608_v55 = vadd.f32 %v982_v47, %v559_v46 }
  0xf6   :  { %v694_v24 = vpop.f32.mrf.mxu1 }
  0xf8   :  { %v1023_v32 = vpop.f32.mrf.mxu1 }
  0xfa   :  { %v697_v41 = vpop.f32.mrf.mxu1 }
 0x102   :  { %v999_v23 = vpop.f32.mrf.mxu0 }
 0x104   :  { %v1000_v26 = vpop.f32.mrf.mxu0 }
 0x105   :  { %v1001_v30 = vadd.f32 %v1000_v26, %v999_v23 }
 0x106   :  { %v1002_v31 = vpop.f32.mrf.mxu0 }
 0x107   :  { %v646_v33 = vadd.f32 %v1001_v30, %v597_v27 }
 0x108   :  { %v1003_v36 = vpop.f32.mrf.mxu0 }
 0x109   :  { %v1004_v39 = vadd.f32 %v1003_v36, %v1002_v31  ;;  %v695_v42 = vadd.f32 %v694_v24, %v646_v33 }
 0x10a   :  { %v1005_v40 = vpop.f32.mrf.mxu0 }
 0x10b   :  { %v649_v43 = vadd.f32 %v1004_v39, %v600_v37  ;;  %v709_v51 = vmax.f32 %v695_v42, 0.0 }
 0x10c   :  { %v1006_v45 = vpop.f32.mrf.mxu0 }
 0x10d   :  { %v1007_v48 = vadd.f32 %v1006_v45, %v1005_v40  ;;  %v698_v49 = vadd.f32 %v697_v41, %v649_v43 }
 0x10e   :  { %v1008_v50 = vpop.f32.mrf.mxu0 }
 0x10f   :  { %v654_v52 = vadd.f32 %v1007_v48, %v605_v44  ;;  %v710_v53 = vmax.f32 %v698_v49, 0.0 }
 0x110   :  { %v1009_v54 = vpop.f32.mrf.mxu0 }
 0x111   :  { %v713_v56 = vpack.c.bf16 %v710_v53, %v709_v51  ;;  %v1010_v57 = vadd.f32 %v1009_v54, %v1008_v50  ;;  %v703_v58 = vadd.f32 %v1022_v18, %v654_v52 }
 0x113   :  { %v657_v59 = vadd.f32 %v1010_v57, %v608_v55  ;;  %1028 = vmatprep.mubr.msk.bf16.mxu1 %vm738_vm1, %v713_v56  ;;  %v711_v61 = vmax.f32 %v703_v58, 0.0 }
 0x115   :  { %v706_v60 = vadd.f32 %v1023_v32, %v657_v59 }
 0x117   :  { %v712_v62 = vmax.f32 %v706_v60, 0.0 }
 0x119   :  { %v714_v63 = vpack.c.bf16 %v712_v62, %v711_v61 }
 0x11b   :  { %1029 = vmatmul.mubr.msk.bf16.vlgmr.msra.gmra.mxu1 %vm738_vm1, %v714_v63 }
 0x1db   :  { %v1030_v1 = vpop.f32.mrf.mxu1 }
 0x1dc   :  { %v1350_v2 = vadd.f32 %v1030_v1, %v922_v0 }
 0x1dd   :  { %v779_v3 = vpop.f32.mrf.mxu1 }
 0x1de   :  { %v780_v4 = vadd.f32 %v922_v0, %v779_v3  ;;  %v801_v5 = vsel %vm794_vm2, %v1350_v2, -inf }
 0x1df   :  { %802 = vmax.xlane.f32.xlu1 %v801_v5  ;;  %v1031_v6 = vpop.f32.mrf.mxu1 }
 0x1e0   :  { %v1354_v7 = vadd.f32 %v1031_v6, %v922_v0  ;;  %v795_v8 = vsel %vm794_vm2, %v780_v4, -inf }
 0x1e1   :  { %v782_v9 = vpop.f32.mrf.mxu1  ;;  %796 = vmax.xlane.f32.xlu0 %v795_v8 }
 0x1e2   :  { %v783_v10 = vadd.f32 %v922_v0, %v782_v9  ;;  %v804_v11 = vsel %vm794_vm2, %v1354_v7, -inf }
 0x1e3   :  { %805 = vmax.xlane.f32.xlu1 %v804_v11 }
 0x1e4   :  { %v798_v12 = vsel %vm794_vm2, %v783_v10, -inf }
 0x1e5   :  { %799 = vmax.xlane.f32.xlu0 %v798_v12 }
 0x268   :  { %v803_v13 = vpop.xlane.xlu1 %802 }
 0x269   :  { %v809_v14 = vsub.f32 %v1350_v2, %v803_v13 }
 0x26a   :  { %v797_v15 = vpop.xlane.xlu0 %796 }
 0x26b   :  { %v807_v16 = vsub.f32 %v780_v4, %v797_v15  ;;  %v815_v18 = vmul.f32 1.442695, %v809_v14 }
 0x26c   :  { %v806_v17 = vpop.xlane.xlu1 %805 }
 0x26d   :  { %v811_v19 = vmul.f32 1.442695, %v807_v16  ;;  %v810_v20 = vsub.f32 %v1354_v7, %v806_v17 }
 0x26e   :  { %v800_v21 = vpop.xlane.xlu0 %799 }
 0x26f   :  { %1103 = vpow2.f32 %v811_v19  ;;  %v808_v22 = vsub.f32 %v783_v10, %v800_v21  ;;  %v817_v23 = vmul.f32 1.442695, %v810_v20 }
 0x270   :  { %1105 = vpow2.f32 %v815_v18 }
 0x271   :  { %v813_v24 = vmul.f32 1.442695, %v808_v22 }
 0x273   :  { %1107 = vpow2.f32 %v813_v24 }
 0x274   :  { %1109 = vpow2.f32 %v817_v23 }
 0x27c   :  { %v1104_v25 = vpop.eup %1103 }
 0x27d   :  { %v819_v26 = vsel %vm794_vm2, %v1104_v25, 0.0  ;;  %v1106_v27 = vpop.eup %1105 }
 0x27e   :  { %820 = vadd.xlane.f32.xlu0 %v819_v26  ;;  %v825_v29 = vsel %vm794_vm2, %v1106_v27, 0.0 }
 0x280   :  { %v1108_v28 = vpop.eup %1107 }
 0x281   :  { %v822_v30 = vsel %vm794_vm2, %v1108_v28, 0.0  ;;  %v1110_v31 = vpop.eup %1109 }
 0x282   :  { %826 = vadd.xlane.f32.xlu0 %v825_v29  ;;  %823 = vadd.xlane.f32.xlu1 %v822_v30  ;;  %v828_v32 = vsel %vm794_vm2, %v1110_v31, 0.0 }
 0x286   :  { %829 = vadd.xlane.f32.xlu1 %v828_v32 }
 0x307   :  { %v821_v33 = vpop.xlane.xlu0 %820 }
 0x308   :  { %1111 = vlog2.f32 %v821_v33 }
 0x30b   :  { %v824_v34 = vpop.xlane.xlu1 %823  ;;  %v827_v35 = vpop.xlane.xlu0 %826 }
 0x30c   :  { %1113 = vlog2.f32 %v824_v34 }
 0x30d   :  { %1115 = vlog2.f32 %v827_v35 }
 0x30f   :  { %v830_v36 = vpop.xlane.xlu1 %829 }
 0x310   :  { %1117 = vlog2.f32 %v830_v36 }
 0x315   :  { %v1112_v37 = vpop.eup %1111 }
 0x316   :  { %v832_v38 = vmul.f32 0.6931472, %v1112_v37 }
 0x318   :  { %v839_v39 = vadd.f32 %v832_v38, %v797_v15 }
 0x319   :  { %v1114_v40 = vpop.eup %1113 }
 0x31a   :  { %v1116_v41 = vpop.eup %1115  ;;  %v843_v42 = vsub.f32 %v839_v39, %v780_v4  ;;  %v834_v43 = vmul.f32 0.6931472, %v1114_v40 }
 0x31b   :  { %v836_v44 = vmul.f32 0.6931472, %v1116_v41 }
 0x31c   :  { %848 = vst.msk [vmem:[%s1389_s5] sm:$0xff] %vm847_vm3, %v843_v42  ;;  %v840_v45 = vadd.f32 %v834_v43, %v800_v21 }
 0x31d   :  { %v1118_v46 = vpop.eup %1117  ;;  %v841_v47 = vadd.f32 %v836_v44, %v803_v13 }
 0x31e   :  { %v844_v48 = vsub.f32 %v840_v45, %v783_v10  ;;  %v838_v49 = vmul.f32 0.6931472, %v1118_v46 }
 0x31f   :  { %v845_v50 = vsub.f32 %v841_v47, %v1350_v2 }
 0x320   :  { %849 = vst.msk [vmem:[%s1389_s5 + $0x8] sm:$0xff] %vm847_vm3, %v844_v48  ;;  %v842_v51 = vadd.f32 %v838_v49, %v806_v17 }
 0x321   :  { %850 = vst.msk [vmem:[%s1389_s5 + $0x10] sm:$0xff] %vm847_vm3, %v845_v50 }
 0x322   :  { %v846_v52 = vsub.f32 %v842_v51, %v1354_v7 }
 0x324   :  { %851 = vst.msk [vmem:[%s1389_s5 + $0x18] sm:$0xff] %vm847_vm3, %v846_v52 }

</bundles_post_ra>
